<compile_context>
chip_gen: v7x
topology: tpu7x:2x2x1
jax: 0.10.0
libtpu: 0.0.40
codegen_flags: <defaults>
</compile_context>

<pallas_src>
import functools

import jax
import jax.numpy as jnp
from jax.experimental import pallas as pl
from jax.experimental.pallas import tpu as pltpu


def _round_up(x, m):
    return (x + m - 1) // m * m


def _simam_kernel(*refs, inv_hw, inv_n, e_lambda, has_mul):
    """One tile of (TM, HW): TM independent (b, c) planes along sublanes."""
    if has_mul:
        x_ref, m_ref, o_ref = refs
    else:
        x_ref, o_ref = refs
        m_ref = None

    x = x_ref[...].astype(jnp.float32)

    # Fused single pass for both lane reductions: sum(x) and sum(x*x).
    # HW is the true (unpadded) extent of the last dim, so Mosaic masks the
    # padding lanes inside the reduction; statistics stay exact.
    sum_x = jnp.sum(x, axis=-1, keepdims=True)        # (TM, 1)
    sum_x2 = jnp.sum(x * x, axis=-1, keepdims=True)   # (TM, 1)
    mu = sum_x * inv_hw
    # One-pass variance can go slightly negative in f32 when |mean| >> std
    # (post-ReLU/BN activations); clamp so the denominator never flips sign.
    s = jnp.maximum(sum_x2 - sum_x * mu, 0.0)         # == sum((x - mu)^2)

    # y = d^2 * coef + 0.5, coef = 0.25 / (s/n + lambda)
    # x*sigmoid(y) = (0.5*x) * (tanh(d^2 * coef/2 + 0.25) + 1)
    # half_coef is per-row (TM, 1): the exact reciprocal touches HW-times
    # fewer elements than the streaming math, so it is free; tanh goes to the
    # EUP (separate bundle slot), keeping the per-element VALU chain short.
    half_coef = 0.125 * pl.reciprocal(s * inv_n + e_lambda, approx=False)

    d = x - mu
    u = (d * d) * half_coef + 0.25
    out = (0.5 * x) * (jnp.tanh(u) + 1.0)
    if m_ref is not None:
        out = out * m_ref[...].astype(jnp.float32)
    o_ref[...] = out.astype(o_ref.dtype)


def simam(x, post_mul=None, e_lambda=1e-4, *,
          target_tile_bytes=4 << 20, vmem_cap_bytes=48 << 20):
    """SimAM forward pass.  x: (B, C, H, W), any float dtype.

    post_mul (optional, same shape/dtype): fuses `simam(x) * post_mul` into the
    same HBM pass (BFAM's inp1_siam*fuse / inp2_siam*fuse pattern).
    """
    b, c, h, w = x.shape
    hw = h * w
    rows = b * c
    dtype = x.dtype
    itemsize = jnp.dtype(dtype).itemsize
    sublane = max(8, 32 // itemsize)       # 8 for f32, 16 for bf16, 32 for i8

    has_mul = post_mul is not None
    if has_mul:
        assert post_mul.shape == x.shape and post_mul.dtype == dtype

    # Contiguous reshape is free (no HBM traffic) — no padding, no slicing.
    inputs = [x.reshape(rows, hw)]
    if has_mul:
        inputs.append(post_mul.reshape(rows, hw))
    n_streams = len(inputs) + 1            # streamed inputs + output

    # ---- row-tile sizing ---------------------------------------------------
    row_bytes = hw * itemsize
    rows_ceil = _round_up(rows, sublane)
    max_steps = rows_ceil // sublane        # cannot split finer than one sublane pack

    # Cap from the per-tile HBM-streaming target (amortizes ~0.35 us/step).
    tm_cap = max(sublane, (target_tile_bytes // row_bytes) // sublane * sublane)

    # Cap from VMEM: double-buffered streamed tiles + ~4 f32 temporaries for
    # the live tile, plus 1 MiB slack.  Fail loudly if even the minimum tile
    # cannot fit (v7x has only 64 MiB/TC).
    per_row_vmem = 2 * n_streams * row_bytes + 4 * hw * 4
    tm_vmem = ((vmem_cap_bytes - (1 << 20)) // per_row_vmem) // sublane * sublane
    if tm_vmem < sublane:
        raise ValueError(
            f"simam: H*W={hw} is too large — a single {sublane}-row tile needs "
            f"~{sublane * per_row_vmem / 2**20:.1f} MiB VMEM, exceeding the "
            f"{vmem_cap_bytes >> 20} MiB budget. Split the spatial axis instead.")
    tm_cap = min(tm_cap, tm_vmem, rows_ceil)

    # Enough grid steps for double-buffering + megacore sharding; even count
    # when possible (v7x has 2 TCs), evenly split rows (no near-empty tail).
    n_steps = pl.cdiv(rows_ceil, tm_cap)
    n_steps = max(n_steps, min(8, max_steps))
    if n_steps > 1 and n_steps % 2 and n_steps < max_steps:
        n_steps += 1
    tm = min(_round_up(pl.cdiv(rows_ceil, n_steps), sublane), rows_ceil)
    grid = (pl.cdiv(rows, tm),)

    vmem_limit = int(min(vmem_cap_bytes,
                         max(32 << 20, tm * per_row_vmem + (1 << 20))))

    kernel = functools.partial(
        _simam_kernel,
        inv_hw=1.0 / hw,
        inv_n=1.0 / float(hw - 1),
        e_lambda=float(e_lambda),
        has_mul=has_mul,
    )

    cost = pl.CostEstimate(
        flops=(10 + (1 if has_mul else 0)) * rows * hw,
        transcendentals=rows * hw,                       # tanh
        bytes_accessed=n_streams * rows * hw * itemsize, # real streamed bytes
    )

    in_specs = [pl.BlockSpec((tm, hw), lambda i: (i, 0)) for _ in inputs]
    out_specs = pl.BlockSpec((tm, hw), lambda i: (i, 0))

    out2d = pl.pallas_call(
        kernel,
        out_shape=jax.ShapeDtypeStruct((rows, hw), dtype),
        grid_spec=pltpu.PrefetchScalarGridSpec(
            num_scalar_prefetch=0,
            grid=grid,
            in_specs=in_specs,
            out_specs=out_specs,
        ),
        compiler_params=pltpu.CompilerParams(
            dimension_semantics=("parallel",),
            vmem_limit_bytes=vmem_limit,
        ),
        cost_estimate=cost,
    )(*inputs)

    return out2d.reshape(b, c, h, w)


def simam_ref(x, e_lambda=1e-4):
    """Pure-JAX reference mirroring the PyTorch forward exactly."""
    b, c, h, w = x.shape
    n = w * h - 1
    mu = jnp.mean(x, axis=(2, 3), keepdims=True)
    d = (x - mu) ** 2
    s = jnp.sum(d, axis=(2, 3), keepdims=True)
    y = d / (4.0 * (s / n + e_lambda)) + 0.5
    return x * jax.nn.sigmoid(y)


def _check(out, ref, name):
    err = float(jnp.max(jnp.abs(out - ref)))
    assert out.shape == ref.shape
    assert jnp.allclose(out, ref, atol=1e-4, rtol=1e-3), f"{name}: max abs err {err}"


if __name__ == "__main__":
    k1, k2, k3, k4 = jax.random.split(jax.random.PRNGKey(0), 4)

    # Case 1: lane-aligned spatial size (16*16 = 256), small B*C.
    x1 = jax.random.normal(k1, (2, 4, 16, 16), dtype=jnp.float32)
    out1 = jax.block_until_ready(simam(x1))
    _check(out1, simam_ref(x1), "case1")

    # Case 2: non-128-multiple spatial size (14*14 = 196), unpadded masked path.
    x2 = jax.random.normal(k2, (2, 8, 14, 14), dtype=jnp.float32)
    out2 = jax.block_until_ready(simam(x2))
    _check(out2, simam_ref(x2), "case2")

    # Case 3: ragged row count (3*5 = 15 planes) -> masked row-tail block.
    x3 = jax.random.normal(k3, (3, 5, 14, 14), dtype=jnp.float32) + 3.0  # mean >> std
    out3 = jax.block_until_ready(simam(x3))
    _check(out3, simam_ref(x3), "case3")

    # Case 4: fused post-multiply (BFAM's inp_siam * fuse in one HBM pass).
    g1 = jax.random.normal(k4, (2, 4, 16, 16), dtype=jnp.float32)
    out4 = jax.block_until_ready(simam(x1, post_mul=g1))
    _check(out4, simam_ref(x1) * g1, "case4")

    print("KERNEL_OK")
</pallas_src>

<mosaic_0001>
module attributes {stable_mosaic.version = 11 : i64} {
  func.func @_simam_kernel(%arg0: i32, %arg1: memref<8x256xf32, #tpu.memory_space<vmem>>, %arg2: memref<8x256xf32, #tpu.memory_space<vmem>>) attributes {dimension_semantics = [#tpu.dimension_semantics<parallel>], iteration_bounds = array<i64: 1>, scalar_prefetch = 0 : i64, scratch_operands = 0 : i64, tpu.core_type = #tpu.core_type<tc>, window_params = [{transform_indices = @transform_0, window_bounds = array<i64: 8, 256>}, {transform_indices = @transform_1, window_bounds = array<i64: 8, 256>}]} {
    %c0 = arith.constant 0 : index
    %c0_0 = arith.constant 0 : index
    %0 = vector.load %arg1[%c0, %c0_0] : memref<8x256xf32, #tpu.memory_space<vmem>>, vector<8x256xf32>
    %cst = arith.constant dense<0.000000e+00> : vector<8xf32>
    %1 = vector.multi_reduction <add>, %0, %cst [1] : vector<8x256xf32> to vector<8xf32>
    %2 = vector.shape_cast %1 : vector<8xf32> to vector<8x1xf32>
    %3 = arith.mulf %0, %0 : vector<8x256xf32>
    %cst_1 = arith.constant dense<0.000000e+00> : vector<8xf32>
    %4 = vector.multi_reduction <add>, %3, %cst_1 [1] : vector<8x256xf32> to vector<8xf32>
    %5 = vector.shape_cast %4 : vector<8xf32> to vector<8x1xf32>
    %cst_2 = arith.constant 3.906250e-03 : f32
    %6 = vector.broadcast %cst_2 : f32 to vector<8x1xf32>
    %7 = arith.mulf %2, %6 : vector<8x1xf32>
    %8 = arith.mulf %2, %7 : vector<8x1xf32>
    %9 = arith.subf %5, %8 : vector<8x1xf32>
    %cst_3 = arith.constant 0.000000e+00 : f32
    %10 = vector.broadcast %cst_3 : f32 to vector<8x1xf32>
    %11 = arith.maximumf %9, %10 : vector<8x1xf32>
    %cst_4 = arith.constant 0.00392156886 : f32
    %12 = vector.broadcast %cst_4 : f32 to vector<8x1xf32>
    %13 = arith.mulf %11, %12 : vector<8x1xf32>
    %cst_5 = arith.constant 9.99999974E-5 : f32
    %14 = vector.broadcast %cst_5 : f32 to vector<8x1xf32>
    %15 = arith.addf %13, %14 : vector<8x1xf32>
    %16 = tpu.reciprocal %15 : vector<8x1xf32> -> vector<8x1xf32>
    %cst_6 = arith.constant 1.250000e-01 : f32
    %17 = vector.broadcast %cst_6 : f32 to vector<8x1xf32>
    %18 = arith.mulf %17, %16 : vector<8x1xf32>
    %19 = vector.broadcast %7 : vector<8x1xf32> to vector<8x256xf32>
    %20 = arith.subf %0, %19 : vector<8x256xf32>
    %21 = arith.mulf %20, %20 : vector<8x256xf32>
    %22 = vector.broadcast %18 : vector<8x1xf32> to vector<8x256xf32>
    %23 = arith.mulf %21, %22 : vector<8x256xf32>
    %cst_7 = arith.constant 2.500000e-01 : f32
    %24 = vector.broadcast %cst_7 : f32 to vector<8x256xf32>
    %25 = arith.addf %23, %24 : vector<8x256xf32>
    %cst_8 = arith.constant 5.000000e-01 : f32
    %26 = vector.broadcast %cst_8 : f32 to vector<8x256xf32>
    %27 = arith.mulf %26, %0 : vector<8x256xf32>
    %28 = math.tanh %25 : vector<8x256xf32>
    %cst_9 = arith.constant 1.000000e+00 : f32
    %29 = vector.broadcast %cst_9 : f32 to vector<8x256xf32>
    %30 = arith.addf %28, %29 : vector<8x256xf32>
    %31 = arith.mulf %27, %30 : vector<8x256xf32>
    %c0_10 = arith.constant 0 : index
    %c0_11 = arith.constant 0 : index
    %32 = vector.load %arg2[%c0_10, %c0_11] : memref<8x256xf32, #tpu.memory_space<vmem>>, vector<8x256xf32>
    tpu.vector_store %arg2[%c0_10, %c0_11], %31 {strides = array<i32>} : memref<8x256xf32, #tpu.memory_space<vmem>>, vector<8x256xf32>,
    return
  }
  func.func @transform_0(%arg0: i32) -> (i32, i32) {
    %c0_i32 = arith.constant 0 : i32
    %c0_i32_0 = arith.constant 0 : i32
    return %arg0, %c0_i32 : i32, i32
  }
  func.func @transform_1(%arg0: i32) -> (i32, i32) {
    %c0_i32 = arith.constant 0 : i32
    %c0_i32_0 = arith.constant 0 : i32
    return %arg0, %c0_i32 : i32, i32
  }
}

</mosaic_0001>

<bundles_post_ra>
// kernel: tpu_custom_call.1
= control target key start
LH: loop header
LB: loop body
LE: loop exit
PB: predicated region body
PF: predicated region fallthrough
CT: control target
= control target key end

     0   :  { %6 = vsyncpa [#allocation3], 0  ;;  %s164_s0 = inlined_call_operand.hbm [shape: f32[8,256], index: 0, kind: input, shape index: {}]   ;;  %s165_s1 = inlined_call_operand.hbm [shape: f32[8,256], index: 1, kind: output, shape index: {}]  }
   0x1   :  { %7 = vsyncpa [#allocation4], 0  ;;  %s128_s6 = smov [#allocation2]   ;;  %s80_s10 = scalar_lea.hbm %s164_s0, 256 }
   0x2   :  { %s14_s7 = sshll.u32 %s128_s6, 4  ;;  %p81_p0 = scmp.ne.s32.totalorder %s164_s0, %s80_s10  ;;  %s15_s7 = int_to_ptr.vmem [resolvable:$true] %s14_s7 }
   0x3   :  { %p84_p1 = scmp.lt.u32.totalorder %s80_s10, %s164_s0 }
   0x5   :  { %p86_p2 = pnand %p84_p1, %p81_p0 }
   0x7   :  { %89 = shalt.err (!%p86_p2)
}
   0x8   :  { %s90_s15 = scalar_lea.vmem %s15_s7, 256  ;;  %p95_p4 = scmp.lt.s32.totalorder %s15_s7, %s15_s7 }
   0x9   :  { %p91_p3 = scmp.ne.s32.totalorder %s15_s7, %s90_s15  ;;  %p96_p5 = scmp.lt.s32.totalorder %s90_s15, %s90_s15 }
   0xb   :  { %p97_p6 = por %p96_p5, %p95_p4 }
   0xd   :  { %p98_p7 = pnand %p97_p6, %p91_p3 }
   0xf   :  { %101 = shalt.err (!%p98_p7)
}
  0x10   :  { %17 = dma.hbm_to_vmem [thread:$0]  %s164_s0, 256, %s15_s7, [#allocation3]  }
  0x11   :  { %124 = dma.done.wait [#allocation3], 256  }
  0x12   :  { %125 = vsyncadd [#allocation3], 4294967040  ;;  %v21_v0 = vld [vmem:[#allocation2] sm:$0xff]  ;;  %v22_v1 = vld [vmem:[#allocation2 + $0x8] sm:$0xff]  ;;  %s129_s0 = smov [#allocation5]  }
  0x13   :  { %v23_v2 = vadd.f32 %v22_v1, %v21_v0  ;;  %v26_v3 = vmul.f32 %v21_v0, %v21_v0  ;;  %v27_v4 = vmul.f32 %v22_v1, %v22_v1  ;;  %v47_v24 = vmul.f32 0.5, %v21_v0  ;;  %s63_s18 = sshll.u32 %s129_s0, 4  ;;  %s64_s18 = int_to_ptr.vmem [resolvable:$true] %s63_s18 }
  0x14   :  { %v48_v26 = vmul.f32 0.5, %v22_v1  ;;  %s102_s19 = scalar_lea.vmem %s64_s18, 256  ;;  %p107_p9 = scmp.lt.s32.totalorder %s64_s18, %s64_s18 }
  0x15   :  { %24 = vadd.xlane.f32.xlu0 %v23_v2  ;;  %v28_v5 = vadd.f32 %v27_v4, %v26_v3  ;;  %p103_p8 = scmp.ne.s32.totalorder %s64_s18, %s102_s19  ;;  %p108_p10 = scmp.lt.s32.totalorder %s102_s19, %s102_s19 }
  0x17   :  { %p109_p11 = por %p108_p10, %p107_p9 }
  0x19   :  { %29 = vadd.xlane.f32.xlu0 %v28_v5  ;;  %p110_p12 = pnand %p109_p11, %p103_p8 }
  0xa2   :  { %v25_v6 = vpop.xlane.xlu0 %24 }
  0xa3   :  { %v31_v7 = vmul.f32 0.00390625, %v25_v6 }
  0xa5   :  { %v32_v8 = vmul.f32 %v31_v7, %v25_v6  ;;  %v39_v14 = vsub.f32 %v21_v0, %v31_v7  ;;  %v40_v15 = vsub.f32 %v22_v1, %v31_v7 }
  0xa6   :  { %v30_v9 = vpop.xlane.xlu0 %29 }
  0xa7   :  { %v33_v10 = vsub.f32 %v30_v9, %v32_v8  ;;  %v41_v17 = vmul.f32 %v39_v14, %v39_v14  ;;  %v42_v18 = vmul.f32 %v40_v15, %v40_v15 }
  0xa9   :  { %v34_v11 = vmax.f32 %v33_v10, 0.0 }
  0xab   :  { %v35_v12 = vmul.f32 0.003921569, %v34_v11 }
  0xad   :  { %v36_v13 = vadd.f32 0.0001, %v35_v12 }
  0xaf   :  { %74 = vrcp.f32 %v36_v13 }
  0xb9   :  { %v75_v16 = vpop.eup %74 }
  0xba   :  { %v38_v19 = vmul.f32 0.125, %v75_v16 }
  0xbc   :  { %v43_v20 = vmul.f32 %v41_v17, %v38_v19  ;;  %v44_v21 = vmul.f32 %v42_v18, %v38_v19 }
  0xbe   :  { %v45_v22 = vadd.f32 0.25, %v43_v20  ;;  %v46_v23 = vadd.f32 0.25, %v44_v21 }
  0xc0   :  { %76 = vtanh.f32 %v45_v22 }
  0xc1   :  { %78 = vtanh.f32 %v46_v23 }
  0xca   :  { %v77_v25 = vpop.eup %76 }
  0xcb   :  { %v79_v27 = vpop.eup %78  ;;  %v51_v28 = vadd.f32 1.0, %v77_v25 }
  0xcc   :  { %v52_v29 = vadd.f32 1.0, %v79_v27 }
  0xcd   :  { %v53_v30 = vmul.f32 %v51_v28, %v47_v24 }
  0xce   :  { %v54_v31 = vmul.f32 %v52_v29, %v48_v26 }
  0xcf   :  { %55 = vst [vmem:[#allocation5] sm:$0xff] %v53_v30 }
  0xd0   :  { %56 = vst [vmem:[#allocation5 + $0x8] sm:$0xff] %v54_v31 }
  0xd1   :  { %113 = shalt.err (!%p110_p12)
}
  0xd2   :  { %s114_s22 = scalar_lea.hbm %s165_s1, 256 }
  0xd3   :  { %p115_p13 = scmp.ne.s32.totalorder %s165_s1, %s114_s22  ;;  %p118_p0 = scmp.lt.u32.totalorder %s114_s22, %s165_s1 }
  0xd5   :  { %p120_p1 = pnand %p118_p0, %p115_p13 }
  0xd7   :  { %123 = shalt.err (!%p120_p1)
}
  0xd8   :  { %66 = dma.vmem_to_hbm [thread:$0]  %s64_s18, 256, %s165_s1, [#allocation4]  }
  0xd9   :  { %126 = dma.done.wait [#allocation4], 256  }
  0xda   :  { %127 = vsyncadd [#allocation4], 4294967040 }
  0xdb   :  { %70 = vsyncpa [#allocation3], 1 }
  0xdc   :  { %71 = vsyncpa [#allocation4], 1 }

</bundles_post_ra>
